<compile_context>
chip_gen: v6e
topology: v6e:2x2x1
jax: 0.10.0
libtpu: 0.0.40
codegen_flags: <defaults>
</compile_context>

<pallas_src>
import jax
import jax.numpy as jnp
from jax.experimental import pallas as pl
from jax.experimental.pallas import tpu as pltpu

# ---- Decoder configuration (synthetic, mirrors a typical VAE-MoG decoder) ----
Z_DIM = 16
HIDDEN_DIM = 64
NUM_CHANNELS = 1
WIDTH = 16
HEIGHT = 16
OUT_DIM = NUM_CHANNELS * WIDTH * HEIGHT   # flattened Bernoulli event size

MAX_TILE_B = 2048     # VMEM-budget cap (safe on v5e's 16 MiB scoped default)
MIN_SPLIT_B = 512     # once padded batch reaches this, force >= 2 grid steps
                      # so v7x megacore can shard the "parallel" batch axis


def _round_up(x, m):
    return ((x + m - 1) // m) * m


def _choose_tiling(batch):
    """Return (tile_b, b_padded): VMEM-budget-first tile, batch padded to it."""
    if batch <= 8:
        # Single ragged tile equal to the full (tiny) array -> valid block.
        return batch, batch
    b8 = _round_up(batch, 8)
    # Enough steps to respect the VMEM tile cap, and >= 2 once there is
    # enough work for megacore sharding to pay off.
    n_steps = max(pl.cdiv(b8, MAX_TILE_B), 2 if b8 >= MIN_SPLIT_B else 1)
    tile_b = _round_up(pl.cdiv(b8, n_steps), 8)
    return tile_b, n_steps * tile_b


def _decoder_kernel(z_ref, w1_ref, b1_ref, w2_ref, b2_ref, logits_ref):
    """Fused 2-layer MLP decoder producing Bernoulli logits for one batch tile.

    z_ref:      (tile_b, z_dim)      f32
    w1_ref:     (z_dim, hidden)      bf16, VMEM-resident across grid steps
    b1_ref:     (1, hidden)          f32
    w2_ref:     (hidden, out)        bf16, VMEM-resident
    b2_ref:     (1, out)             f32
    logits_ref: (tile_b, out)
    """
    # bf16 operands into the MXU (f32 accumulation); elementwise tail in f32.
    z = z_ref[...].astype(jnp.bfloat16)
    h = jnp.dot(z, w1_ref[...], preferred_element_type=jnp.float32)
    h = jnp.maximum(h + b1_ref[...], 0.0)

    logits = jnp.dot(h.astype(jnp.bfloat16), w2_ref[...],
                     preferred_element_type=jnp.float32)
    logits_ref[...] = (logits + b2_ref[...]).astype(logits_ref.dtype)


def bernoulli_likelihood_forward(z, w1, b1, w2, b2, out_dtype=jnp.float32):
    """Forward pass of BernoulliLikelihood.

    Returns the logits of Independent(Bernoulli(logits=h), 3), reshaped to
    (B, num_channels, width, height).  probs = sigmoid(logits) is left to
    the consumer (lazy in torch as well); pass out_dtype=jnp.bfloat16 to
    halve the writeback traffic if the consumer tolerates bf16 logits.
    """
    B = z.shape[0]
    tile_b, b_padded = _choose_tiling(B)

    pad = b_padded - B
    z_in = jnp.pad(z, ((0, pad), (0, 0))) if pad else z

    # One-time weight cast outside the kernel: resident bf16 weights, no
    # per-grid-step repack, half the weight DMA bytes.  Biases stay f32 so
    # the elementwise tail is exact.
    w1_bf = w1.astype(jnp.bfloat16)
    w2_bf = w2.astype(jnp.bfloat16)

    grid = (b_padded // tile_b,)

    logits_flat = pl.pallas_call(
        _decoder_kernel,
        out_shape=jax.ShapeDtypeStruct((b_padded, OUT_DIM), out_dtype),
        grid=grid,
        in_specs=[
            # Batch-tiled activation input (double-buffered by the pipeline).
            pl.BlockSpec((tile_b, Z_DIM), lambda i: (i, 0)),
            # Weights/biases: constant block index -> stay resident in VMEM.
            pl.BlockSpec((Z_DIM, HIDDEN_DIM), lambda i: (0, 0)),
            pl.BlockSpec((1, HIDDEN_DIM), lambda i: (0, 0)),
            pl.BlockSpec((HIDDEN_DIM, OUT_DIM), lambda i: (0, 0)),
            pl.BlockSpec((1, OUT_DIM), lambda i: (0, 0)),
        ],
        out_specs=pl.BlockSpec((tile_b, OUT_DIM), lambda i: (i, 0)),
        compiler_params=pltpu.CompilerParams(
            # Batch steps are independent -> shard across TCs on v7x megacore.
            dimension_semantics=("parallel",)),
    )(z_in, w1_bf, b1, w2_bf, b2)

    logits_flat = logits_flat[:B]
    # Glue: reshape flat event dim to the module's outcome_shape (C, W, H).
    # TODO(synk): torch.distributions.Independent/Bernoulli object itself has
    # no Pallas equivalent; we return its defining parameter (logits).
    return logits_flat.reshape(B, NUM_CHANNELS, WIDTH, HEIGHT)


def _reference(z, w1, b1, w2, b2):
    h = jnp.maximum(z @ w1 + b1, 0.0)
    logits = h @ w2 + b2
    return logits.reshape(z.shape[0], NUM_CHANNELS, WIDTH, HEIGHT)


if __name__ == "__main__":
    key = jax.random.PRNGKey(0)
    kz, k1, k2, k3, k4 = jax.random.split(key, 5)

    # Deterministic synthetic decoder parameters.
    w1 = jax.random.normal(k1, (Z_DIM, HIDDEN_DIM), dtype=jnp.float32) * 0.1
    b1 = jax.random.normal(k2, (1, HIDDEN_DIM), dtype=jnp.float32) * 0.01
    w2 = jax.random.normal(k3, (HIDDEN_DIM, OUT_DIM), dtype=jnp.float32) * 0.1
    b2 = jax.random.normal(k4, (1, OUT_DIM), dtype=jnp.float32) * 0.01

    fwd = jax.jit(bernoulli_likelihood_forward)

    # B=16: single-tile path.  B=44: pads to 48 -> single 48-row tile.
    # B=520: pads to 528 -> tile 264, grid=(2,) (exercises the VMEM-budget
    # tile policy, tile-multiple padding and the >=2-step megacore rule).
    for B in (16, 44, 520):
        z = jax.random.normal(jax.random.fold_in(kz, B), (B, Z_DIM),
                              dtype=jnp.float32)
        logits = jax.block_until_ready(fwd(z, w1, b1, w2, b2))
        ref_logits = _reference(z, w1, b1, w2, b2)

        assert logits.shape == (B, NUM_CHANNELS, WIDTH, HEIGHT)
        # bf16 MXU inputs -> loosened tolerance vs the f32 reference.
        assert jnp.allclose(logits, ref_logits, atol=2e-2, rtol=2e-2), (
            f"logits mismatch at B={B}: "
            f"max |err| = {jnp.max(jnp.abs(logits - ref_logits))}")
        # Bernoulli mean (lazy in torch): sanity-check the derived probs too.
        probs = jax.nn.sigmoid(logits)
        assert jnp.allclose(probs, jax.nn.sigmoid(ref_logits),
                            atol=1e-2, rtol=1e-2)

    print("KERNEL_OK")
</pallas_src>

<mosaic_0001>
module attributes {stable_mosaic.version = 11 : i64} {
  func.func @_decoder_kernel(%arg0: i32, %arg1: memref<16x16xf32, #tpu.memory_space<vmem>>, %arg2: memref<16x64xbf16, #tpu.memory_space<vmem>>, %arg3: memref<1x64xf32, #tpu.memory_space<vmem>>, %arg4: memref<64x256xbf16, #tpu.memory_space<vmem>>, %arg5: memref<1x256xf32, #tpu.memory_space<vmem>>, %arg6: memref<16x256xf32, #tpu.memory_space<vmem>>) attributes {dimension_semantics = [#tpu.dimension_semantics<parallel>], iteration_bounds = array<i64: 1>, scalar_prefetch = 0 : i64, scratch_operands = 0 : i64, tpu.core_type = #tpu.core_type<tc>, window_params = [{transform_indices = @transform_0, window_bounds = array<i64: 16, 16>}, {pipeline_mode = #tpu.pipeline_mode<synchronous>, transform_indices = @transform_1, window_bounds = array<i64: 16, 64>}, {pipeline_mode = #tpu.pipeline_mode<synchronous>, transform_indices = @transform_2, window_bounds = array<i64: 1, 64>}, {pipeline_mode = #tpu.pipeline_mode<synchronous>, transform_indices = @transform_3, window_bounds = array<i64: 64, 256>}, {pipeline_mode = #tpu.pipeline_mode<synchronous>, transform_indices = @transform_4, window_bounds = array<i64: 1, 256>}, {transform_indices = @transform_5, window_bounds = array<i64: 16, 256>}]} {
    %c0 = arith.constant 0 : index
    %c0_0 = arith.constant 0 : index
    %0 = vector.load %arg1[%c0, %c0_0] : memref<16x16xf32, #tpu.memory_space<vmem>>, vector<16x16xf32>
    %1 = arith.truncf %0 : vector<16x16xf32> to vector<16x16xbf16>
    %c0_1 = arith.constant 0 : index
    %c0_2 = arith.constant 0 : index
    %2 = vector.load %arg2[%c0_1, %c0_2] : memref<16x64xbf16, #tpu.memory_space<vmem>>, vector<16x64xbf16>
    %cst = arith.constant dense<0.000000e+00> : vector<16x64xf32>
    %3 = tpu.matmul %1, %2, %cst {dimension_numbers = #tpu.dot_dimension_numbers<[1], [0], [0], [1], [0, 0, 1, 1], [], []>} : vector<16x16xbf16>, vector<16x64xbf16>, vector<16x64xf32> -> vector<16x64xf32>
    %c0_3 = arith.constant 0 : index
    %c0_4 = arith.constant 0 : index
    %4 = vector.load %arg3[%c0_3, %c0_4] : memref<1x64xf32, #tpu.memory_space<vmem>>, vector<1x64xf32>
    %5 = vector.broadcast %4 : vector<1x64xf32> to vector<16x64xf32>
    %6 = arith.addf %3, %5 : vector<16x64xf32>
    %cst_5 = arith.constant 0.000000e+00 : f32
    %7 = vector.broadcast %cst_5 : f32 to vector<16x64xf32>
    %8 = arith.maximumf %6, %7 : vector<16x64xf32>
    %9 = arith.truncf %8 : vector<16x64xf32> to vector<16x64xbf16>
    %c0_6 = arith.constant 0 : index
    %c0_7 = arith.constant 0 : index
    %10 = vector.load %arg4[%c0_6, %c0_7] : memref<64x256xbf16, #tpu.memory_space<vmem>>, vector<64x256xbf16>
    %cst_8 = arith.constant dense<0.000000e+00> : vector<16x256xf32>
    %11 = tpu.matmul %9, %10, %cst_8 {dimension_numbers = #tpu.dot_dimension_numbers<[1], [0], [0], [1], [0, 0, 1, 1], [], []>} : vector<16x64xbf16>, vector<64x256xbf16>, vector<16x256xf32> -> vector<16x256xf32>
    %c0_9 = arith.constant 0 : index
    %c0_10 = arith.constant 0 : index
    %12 = vector.load %arg5[%c0_9, %c0_10] : memref<1x256xf32, #tpu.memory_space<vmem>>, vector<1x256xf32>
    %13 = vector.broadcast %12 : vector<1x256xf32> to vector<16x256xf32>
    %14 = arith.addf %11, %13 : vector<16x256xf32>
    %c0_11 = arith.constant 0 : index
    %c0_12 = arith.constant 0 : index
    %15 = vector.load %arg6[%c0_11, %c0_12] : memref<16x256xf32, #tpu.memory_space<vmem>>, vector<16x256xf32>
    tpu.vector_store %arg6[%c0_11, %c0_12], %14 {strides = array<i32>} : memref<16x256xf32, #tpu.memory_space<vmem>>, vector<16x256xf32>,
    return
  }
  func.func @transform_0(%arg0: i32) -> (i32, i32) {
    %c0_i32 = arith.constant 0 : i32
    %c0_i32_0 = arith.constant 0 : i32
    return %arg0, %c0_i32 : i32, i32
  }
  func.func @transform_1(%arg0: i32) -> (i32, i32) {
    %c0_i32 = arith.constant 0 : i32
    %c0_i32_0 = arith.constant 0 : i32
    %c0_i32_1 = arith.constant 0 : i32
    return %c0_i32, %c0_i32_0 : i32, i32
  }
  func.func @transform_2(%arg0: i32) -> (i32, i32) {
    %c0_i32 = arith.constant 0 : i32
    %c0_i32_0 = arith.constant 0 : i32
    %c0_i32_1 = arith.constant 0 : i32
    return %c0_i32, %c0_i32_0 : i32, i32
  }
  func.func @transform_3(%arg0: i32) -> (i32, i32) {
    %c0_i32 = arith.constant 0 : i32
    %c0_i32_0 = arith.constant 0 : i32
    %c0_i32_1 = arith.constant 0 : i32
    return %c0_i32, %c0_i32_0 : i32, i32
  }
  func.func @transform_4(%arg0: i32) -> (i32, i32) {
    %c0_i32 = arith.constant 0 : i32
    %c0_i32_0 = arith.constant 0 : i32
    %c0_i32_1 = arith.constant 0 : i32
    return %c0_i32, %c0_i32_0 : i32, i32
  }
  func.func @transform_5(%arg0: i32) -> (i32, i32) {
    %c0_i32 = arith.constant 0 : i32
    %c0_i32_0 = arith.constant 0 : i32
    return %arg0, %c0_i32 : i32, i32
  }
}

</mosaic_0001>

<bundles_post_ra>
// kernel: bernoulli_likelihood_forward.1
= control target key start
LH: loop header
LB: loop body
LE: loop exit
PB: predicated region body
PF: predicated region fallthrough
CT: control target
= control target key end

     0   :  { %v238_v0 = vmov 0.0   ;;  %vm239_vm0 = vmmov 0   ;;  %vm39_vm1 = vcmask 130048   ;;  %v240_v13 = vmov 0   ;;  %s322_s1 = inlined_call_operand.vmem [shape: bf16[16,64], index: 1, kind: input, shape index: {}]   ;;  %s323_s0 = inlined_call_operand.vmem [shape: f32[16,16], index: 0, kind: input, shape index: {}]   ;;  %s324_s3 = inlined_call_operand.vmem [shape: bf16[64,256], index: 3, kind: input, shape index: {}]   ;;  %s325_s2 = inlined_call_operand.vmem [shape: f32[1,64], index: 2, kind: input, shape index: {}]   ;;  %s326_s4 = inlined_call_operand.vmem [shape: f32[1,256], index: 4, kind: input, shape index: {}]   ;;  %s327_s5 = inlined_call_operand.vmem [shape: f32[16,256], index: 5, kind: output, shape index: {}]  }
   0x1   :  { %216 = vmatprep.subr.bf16.mxu0 %v238_v0  ;;  %v225_v1 = vld [vmem:[%s322_s1] sm:$0xff]   ;;  %218 = vmatprep.mubr.msk.bf16.mxu0 %vm239_vm0, %v238_v0  ;;  %v22_v3 = vld [vmem:[%s323_s0 + $0x8] sm:$0xff]  ;;  %v226_v5 = vld [vmem:[%s324_s3 + $0x34] ss:$8 sps:$4 sm:$0xff]   ;;  %vm147_vm2 = vcmask 523264   ;;  %v97_v24 = vlaneseq }
   0x2   :  { %v21_v2 = vld [vmem:[%s323_s0] sm:$0xff]  ;;  %217 = vmatpush3.bf16.msra.mxu0 %v225_v1  ;;  %v228_v6 = vld [vmem:[%s324_s3 + $0x30] ss:$8 sps:$4 sm:$0xff]   ;;  %159 = vmatprep.subr.bf16.mxu1 %v226_v5  ;;  %v232_v9 = vld [vmem:[%s324_s3 + $0x14] ss:$8 sps:$4 sm:$0xff]  }
   0x3   :  { %v23_v4 = vpack.c.bf16 %v22_v3, %v21_v2  ;;  %v229_v7 = vld [vmem:[%s324_s3 + $0x24] ss:$8 sps:$4 sm:$0xff]   ;;  %160 = vmatpush1.bf16.msra.mxu1 %v228_v6  ;;  %v231_v8 = vld [vmem:[%s324_s3 + $0x20] ss:$8 sps:$4 sm:$0xff]   ;;  %v234_v10 = vld [vmem:[%s324_s3 + $0x10] ss:$8 sps:$4 sm:$0xff]   ;;  %183 = vmatprep.mubr.bf16.mxu1 %v240_v13 }
   0x4   :  { %161 = vmatprep.subr.bf16.mxu1 %v229_v7  ;;  %v235_v11 = vld [vmem:[%s324_s3 + $0x4] ss:$8 sps:$4 sm:$0xff]   ;;  %v237_v12 = vld [vmem:[%s324_s3] ss:$8 sps:$4 sm:$0xff]   ;;  %v98_v25 = vshrl.u32 %v97_v24, 7 }
   0x5   :  { %219 = vmatmul.mubr.msk.bf16.vlgmr.msra.gmra.mxu0 %vm39_vm1, %v23_v4  ;;  %v202_v14 = vld [vmem:[%s325_s2] ss:$0 sm:$0xff] }
   0x6   :  { %v99_v26 = vsub.s32 0, %v98_v25  ;;  %v95_v27 = vld [vmem:[%s326_s4] sm:$0x3]  ;;  %v103_v28 = vsub.s32 1, %v98_v25 }
   0x7   :  { %162 = vmatpush1.bf16.msra.mxu1 %v231_v8 }
   0x8   :  { %163 = vmatprep.subr.bf16.mxu1 %v232_v9  ;;  %v100_v29 = vrot.slane %v95_v27, %v99_v26  ;;  %v104_v30 = vrot.slane %v95_v27, %v103_v28 }
   0xb   :  { %164 = vmatpush1.bf16.msra.mxu1 %v234_v10 }
   0xc   :  { %165 = vmatprep.subr.bf16.mxu1 %v235_v11 }
   0xf   :  { %166 = vmatpush1.bf16.msra.mxu1 %v237_v12 }
  0xc5   :  { %v77_v15 = vpop.f32.mrf.mxu0 }
  0xc6   :  { %v78_v17 = vadd.f32 %v202_v14, %v77_v15 }
  0xc7   :  { %v220_v16 = vpop.f32.mrf.mxu0 }
  0xc8   :  { %v84_v21 = vmax.f32 %v78_v17, 0.0 }
  0xc9   :  { %v80_v18 = vpop.f32.mrf.mxu0 }
  0xca   :  { %v81_v19 = vadd.f32 %v202_v14, %v80_v18 }
  0xcb   :  { %v221_v20 = vpop.f32.mrf.mxu0 }
  0xcc   :  { %v85_v22 = vmax.f32 %v81_v19, 0.0 }
  0xce   :  { %v86_v23 = vpack.c.bf16 %v85_v22, %v84_v21 }
  0xd0   :  { %213 = vmatmul.mubr.msk.bf16.vlgmr.msra.gmra.mxu1 %vm147_vm2, %v86_v23 }
 0x190   :  { %v185_v31 = vpop.f32.mrf.mxu1 }
 0x191   :  { %v186_v32 = vadd.f32 %v185_v31, %v100_v29 }
 0x192   :  { %v187_v33 = vpop.f32.mrf.mxu1 }
 0x193   :  { %194 = vst [vmem:[%s327_s5] sm:$0xff] %v186_v32  ;;  %v188_v34 = vadd.f32 %v187_v33, %v104_v30 }
 0x194   :  { %v189_v35 = vpop.f32.mrf.mxu1 }
 0x195   :  { %195 = vst [vmem:[%s327_s5 + $0x8] sm:$0xff] %v188_v34  ;;  %v190_v36 = vadd.f32 %v189_v35, %v100_v29 }
 0x196   :  { %v191_v37 = vpop.f32.mrf.mxu1 }
 0x197   :  { %196 = vst [vmem:[%s327_s5 + $0x10] sm:$0xff] %v190_v36  ;;  %v192_v38 = vadd.f32 %v191_v37, %v104_v30 }
 0x199   :  { %197 = vst [vmem:[%s327_s5 + $0x18] sm:$0xff] %v192_v38 }

</bundles_post_ra>
